<compile_context>
chip_gen: v6e
topology: v6e:2x2x1
jax: 0.10.0
libtpu: 0.0.40
codegen_flags: <defaults>
</compile_context>

<pallas_src>
from collections import deque

import jax
import jax.numpy as jnp
from jax.experimental import pallas as pl
from jax.experimental.pallas import tpu as pltpu


# ----------------------------------------------------------------------------
# BFS flatten — faithful port of deeplite's `flatten` (deque / popleft order).
# Pure container manipulation, no tensor compute, so it stays in Python.
# ----------------------------------------------------------------------------
def flatten_outputs(inputs):
    queue = deque([inputs])
    outputs = []
    while queue:
        x = queue.popleft()
        if isinstance(x, (list, tuple)):
            queue.extend(x)
        elif isinstance(x, dict):
            queue.extend(x.values())
        elif isinstance(x, jnp.ndarray):
            outputs.append(x)
    return outputs


# ----------------------------------------------------------------------------
# Pallas kernel: fused 2-layer MLP for one batch tile.
#   hidden = relu(x @ W1 + b1)      (bf16 operands, f32 accumulation)
#   logits = hidden @ W2 + b2
# Both intermediates are written out (as bf16) so the wrapped "model" can
# emit a nested output structure for Flatten to process.
# ----------------------------------------------------------------------------
def mlp_kernel(x_ref, w1_ref, b1_ref, w2_ref, b2_ref, h_ref, y_ref):
    # Fused input cast: x arrives f32 and is narrowed in-register.
    x_bf16 = x_ref[...].astype(jnp.bfloat16)
    # First layer: bf16 x bf16 -> f32 accumulate on the MXU.
    h = jnp.dot(x_bf16, w1_ref[...], preferred_element_type=jnp.float32)
    h = jnp.maximum(h + b1_ref[...], 0.0)
    # Store the bf16 hidden activation, then re-read it from VMEM for the
    # second dot.  This deliberately round-trips h through VMEM so the big
    # f32 intermediate is not live across both matmuls at tm=256 (cheaper
    # than compiler spills; vld slots have slack here).
    h_ref[...] = h.astype(h_ref.dtype)
    y = jnp.dot(h_ref[...], w2_ref[...], preferred_element_type=jnp.float32)
    y_ref[...] = (y + b2_ref[...]).astype(y_ref.dtype)


def mlp_forward(x, w1, b1, w2, b2, *, tm=256):
    """x: [B, Din] f32, w1: [Din, H] bf16, w2: [H, Dout] bf16, biases f32.

    Outputs: hidden [B, H] bf16, logits [B, Dout] bf16.
    """
    B, Din = x.shape
    H = w1.shape[1]
    Dout = w2.shape[1]
    # TODO(synk): ragged batches (B % tm != 0) would need pl.cdiv + masking.
    assert B % tm == 0, "batch must be a multiple of the tile size"
    assert Din % 128 == 0 and H % 128 == 0 and Dout % 128 == 0, (
        "feature dims must be lane-dense (multiples of 128)")

    flops = 2 * B * Din * H + 2 * B * H * Dout
    bytes_accessed = (
        B * Din * 4                                   # x read as f32
        + w1.size * w1.dtype.itemsize + b1.size * b1.dtype.itemsize
        + w2.size * w2.dtype.itemsize + b2.size * b2.dtype.itemsize
        + B * H * 2 + B * Dout * 2)                   # bf16 outputs

    h, y = pl.pallas_call(
        mlp_kernel,
        out_shape=(
            jax.ShapeDtypeStruct((B, H), jnp.bfloat16),
            jax.ShapeDtypeStruct((B, Dout), jnp.bfloat16),
        ),
        grid=(B // tm,),
        in_specs=[
            pl.BlockSpec((tm, Din), lambda i: (i, 0)),   # x: batch-tiled f32
            pl.BlockSpec((Din, H), lambda i: (0, 0)),    # w1: resident
            pl.BlockSpec((1, H), lambda i: (0, 0)),      # b1: resident
            pl.BlockSpec((H, Dout), lambda i: (0, 0)),   # w2: resident
            pl.BlockSpec((1, Dout), lambda i: (0, 0)),   # b2: resident
        ],
        out_specs=(
            pl.BlockSpec((tm, H), lambda i: (i, 0)),     # lane-dense bf16
            pl.BlockSpec((tm, Dout), lambda i: (i, 0)),  # lane-dense bf16
        ),
        compiler_params=pltpu.CompilerParams(
            dimension_semantics=("parallel",),           # shard batch grid across TCs (v7x)
            vmem_limit_bytes=32 * 1024 * 1024,           # > v5e 16 MiB default, < v7x 64 MiB
        ),
        cost_estimate=pl.CostEstimate(
            flops=flops, transcendentals=0, bytes_accessed=bytes_accessed),
    )(x, w1, b1, w2, b2)
    return h, y


# ----------------------------------------------------------------------------
# The wrapped "model": produces a nested output structure, as Flatten expects.
# ----------------------------------------------------------------------------
def inner_model(params, x):
    # No wrapper-side cast: the kernel consumes f32 x and casts in-register.
    h, y = mlp_forward(x, params["w1"], params["b1"], params["w2"], params["b2"])
    # Nested structure: dict of (tuple, tensor) — exercises the BFS flatten.
    return {"features": (h,), "logits": y}


class Flatten:
    """JAX port of deeplite Flatten(model)."""

    def __init__(self, model):
        self.model = model

    def __call__(self, *args, **kwargs):
        outputs = self.model(*args, **kwargs)
        return flatten_outputs(outputs)


if __name__ == "__main__":
    key = jax.random.PRNGKey(0)
    k_x, k_w1, k_w2 = jax.random.split(key, 3)

    # Lane-dense, tileable shapes.  tm=256 amortizes per-step overhead and
    # grid = B // tm = 4 keeps an even (>=2) parallel grid for v7x megacore.
    B, Din, H, Dout = 1024, 128, 128, 128

    x = jax.random.normal(k_x, (B, Din), dtype=jnp.float32)
    params = {
        "w1": (jax.random.normal(k_w1, (Din, H), dtype=jnp.float32) * 0.1
               ).astype(jnp.bfloat16),
        "b1": jnp.zeros((1, H), dtype=jnp.float32),
        "w2": (jax.random.normal(k_w2, (H, Dout), dtype=jnp.float32) * 0.1
               ).astype(jnp.bfloat16),
        "b2": jnp.zeros((1, Dout), dtype=jnp.float32),
    }

    model = Flatten(lambda inp: inner_model(params, inp))
    outs = model(x)

    # BFS flatten order for {"features": (h,), "logits": y} is [y, h]:
    # the tuple is re-queued behind `logits`, so the tensor `y` pops first.
    assert isinstance(outs, list) and len(outs) == 2
    for o in outs:
        jax.block_until_ready(o)
    assert outs[0].shape == (B, Dout)   # logits
    assert outs[1].shape == (B, H)      # hidden features
    assert outs[0].dtype == jnp.bfloat16 and outs[1].dtype == jnp.bfloat16

    # Reference check against plain JAX, mirroring the kernel's casts:
    # bf16 input cast, f32 accumulation, bf16-stored hidden feeding layer 2.
    xb = x.astype(jnp.bfloat16).astype(jnp.float32)
    w1f = params["w1"].astype(jnp.float32)
    w2f = params["w2"].astype(jnp.float32)
    h_f32 = jnp.maximum(xb @ w1f + params["b1"], 0.0)
    h_ref = h_f32.astype(jnp.bfloat16)
    y_ref = (h_ref.astype(jnp.float32) @ w2f + params["b2"]).astype(jnp.bfloat16)
    assert jnp.allclose(outs[1].astype(jnp.float32), h_ref.astype(jnp.float32),
                        atol=2e-2, rtol=2e-2)
    assert jnp.allclose(outs[0].astype(jnp.float32), y_ref.astype(jnp.float32),
                        atol=2e-2, rtol=2e-2)

    print("KERNEL_OK")
</pallas_src>

<mosaic_0001>
module attributes {stable_mosaic.version = 11 : i64} {
  func.func @mlp_kernel(%arg0: i32, %arg1: memref<256x128xf32, #tpu.memory_space<vmem>>, %arg2: memref<128x128xbf16, #tpu.memory_space<vmem>>, %arg3: memref<1x128xf32, #tpu.memory_space<vmem>>, %arg4: memref<128x128xbf16, #tpu.memory_space<vmem>>, %arg5: memref<1x128xf32, #tpu.memory_space<vmem>>, %arg6: memref<256x128xbf16, #tpu.memory_space<vmem>>, %arg7: memref<256x128xbf16, #tpu.memory_space<vmem>>) attributes {dimension_semantics = [#tpu.dimension_semantics<parallel>], iteration_bounds = array<i64: 4>, scalar_prefetch = 0 : i64, scratch_operands = 0 : i64, tpu.core_type = #tpu.core_type<tc>, window_params = [{transform_indices = @transform_0, window_bounds = array<i64: 256, 128>}, {pipeline_mode = #tpu.pipeline_mode<synchronous>, transform_indices = @transform_1, window_bounds = array<i64: 128, 128>}, {pipeline_mode = #tpu.pipeline_mode<synchronous>, transform_indices = @transform_2, window_bounds = array<i64: 1, 128>}, {pipeline_mode = #tpu.pipeline_mode<synchronous>, transform_indices = @transform_3, window_bounds = array<i64: 128, 128>}, {pipeline_mode = #tpu.pipeline_mode<synchronous>, transform_indices = @transform_4, window_bounds = array<i64: 1, 128>}, {transform_indices = @transform_5, window_bounds = array<i64: 256, 128>}, {transform_indices = @transform_6, window_bounds = array<i64: 256, 128>}]} {
    %c0 = arith.constant 0 : index
    %c0_0 = arith.constant 0 : index
    %0 = vector.load %arg1[%c0, %c0_0] : memref<256x128xf32, #tpu.memory_space<vmem>>, vector<256x128xf32>
    %1 = arith.truncf %0 : vector<256x128xf32> to vector<256x128xbf16>
    %c0_1 = arith.constant 0 : index
    %c0_2 = arith.constant 0 : index
    %2 = vector.load %arg2[%c0_1, %c0_2] : memref<128x128xbf16, #tpu.memory_space<vmem>>, vector<128x128xbf16>
    %cst = arith.constant dense<0.000000e+00> : vector<256x128xf32>
    %3 = tpu.matmul %1, %2, %cst {dimension_numbers = #tpu.dot_dimension_numbers<[1], [0], [0], [1], [0, 0, 1, 1], [], []>} : vector<256x128xbf16>, vector<128x128xbf16>, vector<256x128xf32> -> vector<256x128xf32>
    %c0_3 = arith.constant 0 : index
    %c0_4 = arith.constant 0 : index
    %4 = vector.load %arg3[%c0_3, %c0_4] : memref<1x128xf32, #tpu.memory_space<vmem>>, vector<1x128xf32>
    %5 = vector.broadcast %4 : vector<1x128xf32> to vector<256x128xf32>
    %6 = arith.addf %3, %5 : vector<256x128xf32>
    %cst_5 = arith.constant 0.000000e+00 : f32
    %7 = vector.broadcast %cst_5 : f32 to vector<256x128xf32>
    %8 = arith.maximumf %6, %7 : vector<256x128xf32>
    %9 = arith.truncf %8 : vector<256x128xf32> to vector<256x128xbf16>
    %c0_6 = arith.constant 0 : index
    %c0_7 = arith.constant 0 : index
    %10 = vector.load %arg6[%c0_6, %c0_7] : memref<256x128xbf16, #tpu.memory_space<vmem>>, vector<256x128xbf16>
    tpu.vector_store %arg6[%c0_6, %c0_7], %9 {strides = array<i32>} : memref<256x128xbf16, #tpu.memory_space<vmem>>, vector<256x128xbf16>,
    %c0_8 = arith.constant 0 : index
    %c0_9 = arith.constant 0 : index
    %11 = vector.load %arg6[%c0_8, %c0_9] : memref<256x128xbf16, #tpu.memory_space<vmem>>, vector<256x128xbf16>
    %c0_10 = arith.constant 0 : index
    %c0_11 = arith.constant 0 : index
    %12 = vector.load %arg4[%c0_10, %c0_11] : memref<128x128xbf16, #tpu.memory_space<vmem>>, vector<128x128xbf16>
    %cst_12 = arith.constant dense<0.000000e+00> : vector<256x128xf32>
    %13 = tpu.matmul %11, %12, %cst_12 {dimension_numbers = #tpu.dot_dimension_numbers<[1], [0], [0], [1], [0, 0, 1, 1], [], []>} : vector<256x128xbf16>, vector<128x128xbf16>, vector<256x128xf32> -> vector<256x128xf32>
    %c0_13 = arith.constant 0 : index
    %c0_14 = arith.constant 0 : index
    %14 = vector.load %arg5[%c0_13, %c0_14] : memref<1x128xf32, #tpu.memory_space<vmem>>, vector<1x128xf32>
    %15 = vector.broadcast %14 : vector<1x128xf32> to vector<256x128xf32>
    %16 = arith.addf %13, %15 : vector<256x128xf32>
    %17 = arith.truncf %16 : vector<256x128xf32> to vector<256x128xbf16>
    %c0_15 = arith.constant 0 : index
    %c0_16 = arith.constant 0 : index
    %18 = vector.load %arg7[%c0_15, %c0_16] : memref<256x128xbf16, #tpu.memory_space<vmem>>, vector<256x128xbf16>
    tpu.vector_store %arg7[%c0_15, %c0_16], %17 {strides = array<i32>} : memref<256x128xbf16, #tpu.memory_space<vmem>>, vector<256x128xbf16>,
    return
  }
  func.func @transform_0(%arg0: i32) -> (i32, i32) {
    %c0_i32 = arith.constant 0 : i32
    %c0_i32_0 = arith.constant 0 : i32
    return %arg0, %c0_i32 : i32, i32
  }
  func.func @transform_1(%arg0: i32) -> (i32, i32) {
    %c0_i32 = arith.constant 0 : i32
    %c0_i32_0 = arith.constant 0 : i32
    %c0_i32_1 = arith.constant 0 : i32
    return %c0_i32, %c0_i32_0 : i32, i32
  }
  func.func @transform_2(%arg0: i32) -> (i32, i32) {
    %c0_i32 = arith.constant 0 : i32
    %c0_i32_0 = arith.constant 0 : i32
    %c0_i32_1 = arith.constant 0 : i32
    return %c0_i32, %c0_i32_0 : i32, i32
  }
  func.func @transform_3(%arg0: i32) -> (i32, i32) {
    %c0_i32 = arith.constant 0 : i32
    %c0_i32_0 = arith.constant 0 : i32
    %c0_i32_1 = arith.constant 0 : i32
    return %c0_i32, %c0_i32_0 : i32, i32
  }
  func.func @transform_4(%arg0: i32) -> (i32, i32) {
    %c0_i32 = arith.constant 0 : i32
    %c0_i32_0 = arith.constant 0 : i32
    %c0_i32_1 = arith.constant 0 : i32
    return %c0_i32, %c0_i32_0 : i32, i32
  }
  func.func @transform_5(%arg0: i32) -> (i32, i32) {
    %c0_i32 = arith.constant 0 : i32
    %c0_i32_0 = arith.constant 0 : i32
    return %arg0, %c0_i32 : i32, i32
  }
  func.func @transform_6(%arg0: i32) -> (i32, i32) {
    %c0_i32 = arith.constant 0 : i32
    %c0_i32_0 = arith.constant 0 : i32
    return %arg0, %c0_i32 : i32, i32
  }
}

</mosaic_0001>

<bundles_post_ra>
// kernel: tpu_custom_call.1
= control target key start
LH: loop header
LB: loop body
LE: loop exit
PB: predicated region body
PF: predicated region fallthrough
CT: control target
= control target key end

     0   :  { %12 = vsyncpa [#allocation3], 0  ;;  %s2713_s0 = inlined_call_operand.hbm [shape: f32[1024,128], index: 0, kind: input, shape index: {}]   ;;  %s2714_s1 = inlined_call_operand.hbm [shape: bf16[128,128], index: 1, kind: input, shape index: {}]   ;;  %s2715_s2 = inlined_call_operand.vmem [shape: f32[1,128], index: 2, kind: input, shape index: {}]   ;;  %s2716_s3 = inlined_call_operand.hbm [shape: bf16[128,128], index: 3, kind: input, shape index: {}]   ;;  %s2717_s4 = inlined_call_operand.vmem [shape: f32[1,128], index: 4, kind: input, shape index: {}]   ;;  %s2718_s5 = inlined_call_operand.hbm [shape: bf16[1024,128], index: 5, kind: output, shape index: {0}]   ;;  %s2719_s6 = inlined_call_operand.hbm [shape: bf16[1024,128], index: 6, kind: output, shape index: {1}]  }
   0x1   :  { %14 = vsyncpa [#allocation3 + $0x1], 0 }
   0x2   :  { %15 = vsyncpa [#allocation6], 0 }
   0x3   :  { %16 = vsyncpa [#allocation4], 0 }
   0x4   :  { %18 = vsyncpa [#allocation4 + $0x1], 0 }
   0x5   :  { %19 = vsyncpa [#allocation10], 0 }
   0x6   :  { %21 = vsyncpa [#allocation10 + $0x1], 0  ;;  %s2322_s21 = smov 0   ;;  %s2324_s22 = smov 0  }
   0x7   :  { %s2326_s23 = smov 0   ;;  %s2328_s24 = smov 0  }
   0x8 LB: > { %s2343_s25 = sadd.s32 4294967295, %s2274_s24   ;;  %s1465_s26 = sadd.s32 4294967294, %s2274_s24   ;;  %s2274_s24 = sphi %s2328_s24, %s2740_s24   ;;  %s2270_s23 = sphi %s2326_s23, %s2739_s23   ;;  %s2266_s22 = sphi %s2324_s22, %s2738_s22   ;;  %s2262_s21 = sphi %s2322_s21, %s2737_s21  }
   0x9   : > { %p47_p0 = scmp.ne.s32.totalorder %s2266_s22, %s2262_s21  ;;  %p2720_p1 = scmp.eq.s32.totalorder %s2343_s25, 0 }
   0xa   : > { %p161_p3 = scmp.eq.s32.totalorder %s1465_s26, 3  ;;  %p1466_p5 = scmp.ge.s32.totalorder %s2274_s24, 1 }
   0xb   : > { %p2352_p4 = por %p2720_p1, %p47_p0  ;;  %p194_p7 = scmp.lt.s32.totalorder %s2274_s24, 5 }
   0xc   : > { %p2357_p6 = por %p161_p3, %p47_p0  ;;  %s2276_s30 = smov [#allocation5]  }
   0xd   : > { %s2724_s27 = scalar_select %p2352_p4, 1, 0 }
   0xe   : > { %s2725_s28 = scalar_select %p2357_p6, 1, 0 }
   0xf   : > { %p2362_p8 = pnand %p1466_p5, %p194_p7  ;;  %s206_s7 = sshll.u32 %s2276_s30, 4  ;;  %s207_s7 = int_to_ptr.vmem [resolvable:$true] %s206_s7 }
  0x10   : > { %s2277_s9 = smov [#allocation7]   ;;  %s2107_s11 = scalar_lea.vmem %s207_s7, 1024 }
  0x11   : > { %s2726_s29 = scalar_select %p2362_p8, 1, 0 }
  0x12   : > { %p2000_p9 = pneg %p2362_p8  ;;  %s222_s10 = sshll.u32 %s2277_s9, 4  ;;  %s223_s10 = int_to_ptr.vmem [resolvable:$true] %s222_s10 }
  0x13   : > { %p2108_p12 = scmp.ne.s32.totalorder %s207_s7, %s2107_s11  ;;  %p2115_p3 = scmp.lt.s32.totalorder %s207_s7, %s207_s7 }
  0x14   : > { %p2370_p10 = pnand %p2000_p9, %p2720_p1  ;;  %p2116_p5 = scmp.lt.s32.totalorder %s2107_s11, %s2107_s11 }
  0x16   : > { %p2098_p11 = pneg %p2370_p10  ;;  %p2117_p7 = por %p2116_p5, %p2115_p3 }
  0x18   : > { %p2110_p13 = pnand %p2108_p12, %p2098_p11 }
  0x1a   : > { %p2111_p0 = pneg %p2110_p13 }
  0x1c   : > { %p2118_p9 = pnand %p2117_p7, %p2111_p0 }
  0x1e   : > { %2121 = shalt.err (!%p2118_p9)
}
  0x1f   : > { %s2278_s12 = smov 64   ;;  %s2279_s13 = smov 4  }
  0x20   : > { %2003 = dma.hbm_to_vmem [thread:$0]  (!%p2370_p10), %s2714_s1, 1024, %s207_s7, [#allocation6], %s2278_s12, %s2278_s12, %s2279_s13  }
  0x21   : > { %s2133_s16 = scalar_lea.vmem %s223_s10, 1024  ;;  %p2141_p2 = scmp.lt.s32.totalorder %s223_s10, %s223_s10 }
  0x22   : > { %p2134_p1 = scmp.ne.s32.totalorder %s223_s10, %s2133_s16  ;;  %p2142_p6 = scmp.lt.s32.totalorder %s2133_s16, %s2133_s16 }
  0x24   : > { %p2136_p12 = pnand %p2134_p1, %p2098_p11  ;;  %p2143_p3 = por %p2142_p6, %p2141_p2 }
  0x26   : > { %p2137_p13 = pneg %p2136_p12 }
  0x28   : > { %p2144_p0 = pnand %p2143_p3, %p2137_p13 }
  0x2a   : > { %2147 = shalt.err (!%p2144_p0)
}
  0x2b   : > { %2006 = dma.hbm_to_vmem [thread:$0]  (!%p2370_p10), %s2716_s3, 1024, %s223_s10, [#allocation6], %s2278_s12, %s2278_s12, %s2279_s13  }
  0x2c   : > { %s2393_s19 = sadd.s32 1, %s2274_s24   ;;  %s34_s20 = sadd.s32 1, %s2270_s23 }
  0x2d   : > { %s31_s26 = ssub.s32 %s2274_s24, %s2393_s19  ;;  %p41_p1 = scmp.ne.s32.totalorder %s2270_s23, %s2266_s22 }
  0x2e   : > { %p32_p2 = scmp.eq.s32.totalorder %s31_s26, 0  ;;  %p42_p6 = scmp.eq.s32.totalorder %s2274_s24, 0 }
  0x2f   : > { %p2728_p11 = scmp.eq.s32.totalorder %s2343_s25, 3  ;;  %p2020_p7 = scmp.lt.s32.totalorder %s2274_s24, 4 }
  0x30   : > { %s2409_s7 = scalar_select %p32_p2, %s2270_s23, %s34_s20  }
  0x31   : > { %p2403_p5 = por %p2728_p11, %p41_p1  ;;  %p43_p9 = por %p42_p6, %p41_p1 }
  0x32   : > { %s239_s8 = sand.u32 1, %s2270_s23   ;;  %s1585_s10 = sshll.u32 %s2274_s24, 12 }
  0x33   : > { %s2729_s30 = scalar_select %p2403_p5, 1, 0 }
  0x34   : > { %s1470_s9 = sshll.u32 %s239_s8, 8  ;;  %s2416_s13 = scalar_lea.hbm %s2713_s0, %s1585_s10 }
  0x35   : > { %s243_s14 = scalar_lea.vmem [#allocation2], %s1470_s9  ;;  %p2420_p10 = pnand %p2020_p7, %p43_p9 }
  0x36   : > { %s250_s15 = sshll.u32 %s243_s14, 4  ;;  %s2424_s17 = scalar_lea.sflag [#allocation3], %s239_s8  ;;  %s2418_s15 = int_to_ptr.vmem [resolvable:$true] %s250_s15 }
  0x37   : > { %s2148_s18 = scalar_lea.hbm %s2416_s13, 4096  ;;  %p2150_p13 = pneg %p2420_p10 }
  0x38   : > { %p2149_p12 = scmp.ne.s32.totalorder %s2416_s13, %s2148_s18  ;;  %s2153_s9 = scalar_lea.hbm %s2713_s0, 16384 }
  0x39   : > { %p2154_p1 = scmp.lt.s32.totalorder %s2416_s13, %s2713_s0  ;;  %p2155_p2 = scmp.lt.s32.totalorder %s2153_s9, %s2148_s18 }
  0x3a   : > { %p2151_p3 = pnand %p2150_p13, %p2149_p12 }
  0x3b   : > { %p2156_p6 = por %p2155_p2, %p2154_p1 }
  0x3c   : > { %p2152_p0 = pneg %p2151_p3 }
  0x3e   : > { %p2157_p11 = pnand %p2156_p6, %p2152_p0 }
  0x40   : > { %2160 = shalt.err (!%p2157_p11)
}
  0x41   : > { %s2161_s8 = scalar_lea.vmem %s2418_s15, 4096  ;;  %s2280_s12 = smov [#allocation2]  }
  0x42   : > { %p2162_p7 = scmp.ne.s32.totalorder %s2418_s15, %s2161_s8  ;;  %s2166_s14 = sshll.u32 %s2280_s12, 4  ;;  %s2167_s14 = int_to_ptr.vmem [resolvable:$false] %s2166_s14 }
  0x43   : > { %s2168_s20 = scalar_lea.vmem %s2167_s14, 8192  ;;  %p2169_p3 = scmp.lt.s32.totalorder %s2418_s15, %s2167_s14 }
  0x44   : > { %p2164_p9 = pnand %p2162_p7, %p2150_p13  ;;  %p2170_p5 = scmp.lt.s32.totalorder %s2168_s20, %s2161_s8 }
  0x46   : > { %p2165_p12 = pneg %p2164_p9  ;;  %p2171_p4 = por %p2170_p5, %p2169_p3 }
  0x48   : > { %p2172_p8 = pnand %p2171_p4, %p2165_p12 }
  0x4a   : > { %2175 = shalt.err (!%p2172_p8)
}
  0x4b   : > { %s2281_s18 = smov 128   ;;  %s2282_s26 = smov 8  }
  0x4c   : > { %2010 = dma.hbm_to_vmem [thread:$0]  (!%p2420_p10), %s2416_s13, 4096, %s2418_s15, %s2424_s17, %s2281_s18, %s2281_s18, %s2282_s26  }
  0x4d   : > { %p2731_p13 = scmp.ne.s32.totalorder %s2726_s29, 0 }
  0x4e   : > { %s2448_s9 = sand.u32 (!%p2731_p13), 1, %s2266_s22   ;;  %p2732_p4 = scmp.ne.s32.totalorder (!%p2731_p13), %s2724_s27, 0 }
  0x4f   : > { %262 = sbr.rel (%p2731_p13) target bundleno = 607 (0x25f), region = 40  ;;  %s1474_s10 = sshll.u32 (!%p2731_p13), %s2448_s9, 8 }
  0x50   : > { %s265_s11 = scalar_lea.sflag (!%p2731_p13), [#allocation3], %s2448_s9  ;;  %s2452_s8 = scalar_lea.vmem (!%p2731_p13), [#allocation2], %s1474_s10 }
  0x54   : > { %2245 = dma.done.wait (%p2732_p4), %s265_s11, 4096  }
  0x55   : > { %2247 = vsyncadd (%p2732_p4), %s265_s11, 4294963200  ;;  %p2733_p8 = scmp.eq.s32.totalorder %s2343_s25, 0 }
  0x57   : > { %2249 = dma.done.wait (%p2733_p8), [#allocation6], 2048   ;;  %p2734_p5 = pmov %p2733_p8 }
  0x58   : > { %v2064_v0 = vld [vmem:[#allocation5 + $0x38] sm:$0xff]   ;;  %v2065_v1 = vld [vmem:[#allocation5 + $0x30] sm:$0xff]   ;;  %v2066_v2 = vld [vmem:[#allocation5 + $0x28] sm:$0xff]   ;;  %s1477_s13 = sshll.u32 %s2448_s9, 7  ;;  %s1650_s16 = sshll.u32 %s2343_s25, 11 }
  0x59   : > { %2251 = vsyncadd (%p2734_p5), [#allocation6], 4294965248  ;;  %1890 = vmatprep.subr.bf16.mxu0 %v2064_v0  ;;  %v2067_v3 = vld [vmem:[#allocation5 + $0x20] sm:$0xff]   ;;  %v315_v5 = vld [vmem:[%s2452_s8 + $0x8] sm:$0xff]  ;;  %s2506_s15 = scalar_lea.vmem [#allocation8], %s1477_s13  ;;  %s2575_s20 = scalar_lea.hbm %s2718_s5, %s1650_s16 }
  0x5a   : > { %1891 = vmatpush3.bf16.msra.mxu0 %v2064_v0  ;;  %v314_v4 = vld [vmem:[%s2452_s8] sm:$0xff]  ;;  %v2068_v7 = vld [vmem:[#allocation5 + $0x18] sm:$0xff]   ;;  %v2069_v8 = vld [vmem:[#allocation5 + $0x10] sm:$0xff]   ;;  %s1325_s17 = sshll.u32 %s2506_s15, 4  ;;  %s1307_s18 = scalar_lea.sflag [#allocation4], %s2448_s9  ;;  %s2577_s17 = int_to_ptr.vmem [resolvable:$true] %s1325_s17 }
  0x5b   : > { %1892 = vmatprep.subr.bf16.mxu0 %v2065_v1  ;;  %v346_v6 = vpack.c.bf16 %v315_v5, %v314_v4  ;;  %v2070_v9 = vld [vmem:[#allocation5 + $0x8] sm:$0xff]   ;;  %v2072_v10 = vld [vmem:[#allocation7 + $0x38] sm:$0xff]   ;;  %v2073_v11 = vld [vmem:[#allocation7 + $0x30] sm:$0xff]   ;;  %s2176_s26 = scalar_lea.vmem %s2577_s17, 2048  ;;  %p2735_p0 = scmp.ne.s32.totalorder %s2729_s30, 0 }
  0x5c   : > { %1938 = vmatprep.subr.bf16.mxu1 %v2072_v10  ;;  %v2071_v12 = vld [vmem:[#allocation5] sm:$0xff]   ;;  %v316_v13 = vld [vmem:[%s2452_s8 + $0x10] sm:$0xff]  ;;  %v317_v14 = vld [vmem:[%s2452_s8 + $0x18] sm:$0xff]  ;;  %p2177_p10 = scmp.ne.s32.totalorder %s2577_s17, %s2176_s26  ;;  %s2283_s10 = smov [#allocation8]  }
  0x5d   : > { %1906 = vmatprep.mubr.bf16.mxu0 %v346_v6  ;;  %1939 = vmatpush3.bf16.msra.mxu1 %v2072_v10  ;;  %v318_v15 = vld [vmem:[%s2452_s8 + $0x20] sm:$0xff]  ;;  %v319_v16 = vld [vmem:[%s2452_s8 + $0x28] sm:$0xff]  ;;  %v347_v17 = vpack.c.bf16 %v317_v14, %v316_v13  ;;  %v320_v19 = vld [vmem:[%s2452_s8 + $0x30] sm:$0xff]  ;;  %s2180_s11 = sshll.u32 %s2283_s10, 4  ;;  %s2181_s11 = int_to_ptr.vmem [resolvable:$false] %s2180_s11 }
  0x5e   : > { %1893 = vmatpush3.bf16.msra.mxu0 %v2065_v1  ;;  %1940 = vmatprep.subr.bf16.mxu1 %v2073_v11  ;;  %v348_v18 = vpack.c.bf16 %v319_v16, %v318_v15  ;;  %v321_v20 = vld [vmem:[%s2452_s8 + $0x38] sm:$0xff]  ;;  %v322_v21 = vld [vmem:[%s2452_s8 + $0x40] sm:$0xff]  ;;  %v323_v22 = vld [vmem:[%s2452_s8 + $0x48] sm:$0xff]  ;;  %p2178_p1 = pnand %p2177_p10, %p2735_p0  ;;  %p2183_p6 = scmp.lt.s32.totalorder %s2577_s17, %s2181_s11 }
  0x5f   : > { %1894 = vmatprep.subr.bf16.mxu0 %v2066_v2  ;;  %v349_v23 = vpack.c.bf16 %v321_v20, %v320_v19  ;;  %v350_v24 = vpack.c.bf16 %v323_v22, %v322_v21  ;;  %v324_v25 = vld [vmem:[%s2452_s8 + $0x50] sm:$0xff]  ;;  %v325_v26 = vld [vmem:[%s2452_s8 + $0x58] sm:$0xff]  ;;  %v326_v27 = vld [vmem:[%s2452_s8 + $0x60] sm:$0xff] }
  0x60   : > { %v327_v28 = vld [vmem:[%s2452_s8 + $0x68] sm:$0xff]  ;;  %v351_v29 = vpack.c.bf16 %v325_v26, %v324_v25  ;;  %v328_v31 = vld [vmem:[%s2452_s8 + $0x70] sm:$0xff]  ;;  %v329_v32 = vld [vmem:[%s2452_s8 + $0x78] sm:$0xff]  ;;  %p2179_p2 = pneg %p2178_p1 }
  0x61   : > { %1941 = vmatpush3.bf16.msra.mxu1 %v2073_v11  ;;  %v352_v30 = vpack.c.bf16 %v327_v28, %v326_v27  ;;  %v330_v33 = vld [vmem:[%s2452_s8 + $0x80] sm:$0xff]  ;;  %v331_v34 = vld [vmem:[%s2452_s8 + $0x88] sm:$0xff]  ;;  %v353_v35 = vpack.c.bf16 %v329_v32, %v328_v31  ;;  %v332_v37 = vld [vmem:[%s2452_s8 + $0x90] sm:$0xff] }
  0x62   : > { %1895 = vmatpush3.bf16.msra.mxu0 %v2066_v2  ;;  %v354_v36 = vpack.c.bf16 %v331_v34, %v330_v33  ;;  %v333_v38 = vld [vmem:[%s2452_s8 + $0x98] sm:$0xff]  ;;  %v334_v39 = vld [vmem:[%s2452_s8 + $0xa0] sm:$0xff]  ;;  %v335_v40 = vld [vmem:[%s2452_s8 + $0xa8] sm:$0xff] }
  0x63   : > { %1896 = vmatprep.subr.bf16.mxu0 %v2067_v3  ;;  %v355_v41 = vpack.c.bf16 %v333_v38, %v332_v37  ;;  %v356_v42 = vpack.c.bf16 %v335_v40, %v334_v39  ;;  %v336_v43 = vld [vmem:[%s2452_s8 + $0xb0] sm:$0xff]  ;;  %v337_v44 = vld [vmem:[%s2452_s8 + $0xb8] sm:$0xff]  ;;  %v338_v45 = vld [vmem:[%s2452_s8 + $0xc0] sm:$0xff] }
  0x64   : > { %v339_v46 = vld [vmem:[%s2452_s8 + $0xc8] sm:$0xff]  ;;  %v357_v47 = vpack.c.bf16 %v337_v44, %v336_v43  ;;  %v340_v49 = vld [vmem:[%s2452_s8 + $0xd0] sm:$0xff]  ;;  %v341_v50 = vld [vmem:[%s2452_s8 + $0xd8] sm:$0xff] }
  0x65   : > { %v358_v48 = vpack.c.bf16 %v339_v46, %v338_v45  ;;  %v342_v51 = vld [vmem:[%s2452_s8 + $0xe0] sm:$0xff]  ;;  %v343_v52 = vld [vmem:[%s2452_s8 + $0xe8] sm:$0xff]  ;;  %v359_v53 = vpack.c.bf16 %v341_v50, %v340_v49  ;;  %v344_v55 = vld [vmem:[%s2452_s8 + $0xf0] sm:$0xff] }
  0x66   : > { %1897 = vmatpush3.bf16.msra.mxu0 %v2067_v3  ;;  %v360_v54 = vpack.c.bf16 %v343_v52, %v342_v51  ;;  %v345_v56 = vld [vmem:[%s2452_s8 + $0xf8] sm:$0xff]  ;;  %v2074_v58 = vld [vmem:[#allocation7 + $0x28] sm:$0xff]   ;;  %v2075_v59 = vld [vmem:[#allocation7 + $0x20] sm:$0xff]   ;;  %s2182_s8 = scalar_lea.vmem %s2181_s11, 4096 }
  0x67   : > { %1898 = vmatprep.subr.bf16.mxu0 %v2068_v7  ;;  %v361_v57 = vpack.c.bf16 %v345_v56, %v344_v55  ;;  %1942 = vmatprep.subr.bf16.mxu1 %v2074_v58  ;;  %v2076_v60 = vld [vmem:[#allocation7 + $0x18] sm:$0xff]   ;;  %v2077_v61 = vld [vmem:[#allocation7 + $0x10] sm:$0xff]   ;;  %v2078_v62 = vld [vmem:[#allocation7 + $0x8] sm:$0xff]   ;;  %p2184_p11 = scmp.lt.s32.totalorder %s2182_s8, %s2176_s26 }
  0x68   : > { %1943 = vmatpush3.bf16.msra.mxu1 %v2074_v58  ;;  %v2079_v63 = vld [vmem:[#allocation7] sm:$0xff]  }
  0x69   : > { %1944 = vmatprep.subr.bf16.mxu1 %v2075_v59  ;;  %v2497_v1 = vld [vmem:[%s2715_s2] ss:$0 sm:$0xff]  ;;  %p2185_p7 = por %p2184_p11, %p2183_p6 }
  0x6a   : > { %1899 = vmatpush3.bf16.msra.mxu0 %v2068_v7 }
  0x6b   : > { %1900 = vmatprep.subr.bf16.mxu0 %v2069_v8  ;;  %p2186_p9 = pnand %p2185_p7, %p2179_p2 }
  0x6c   : > { %1945 = vmatpush3.bf16.msra.mxu1 %v2075_v59 }
  0x6d   : > { %1946 = vmatprep.subr.bf16.mxu1 %v2076_v60 }
  0x6e   : > { %1901 = vmatpush3.bf16.msra.mxu0 %v2069_v8 }
  0x6f   : > { %1902 = vmatprep.subr.bf16.mxu0 %v2070_v9 }
  0x70   : > { %1947 = vmatpush3.bf16.msra.mxu1 %v2076_v60 }
  0x71   : > { %1948 = vmatprep.subr.bf16.mxu1 %v2077_v61 }
  0x72   : > { %1903 = vmatpush3.bf16.msra.mxu0 %v2070_v9 }
  0x73   : > { %1904 = vmatprep.subr.bf16.mxu0 %v2071_v12 }
  0x74   : > { %1949 = vmatpush3.bf16.msra.mxu1 %v2077_v61 }
  0x75   : > { %1950 = vmatprep.subr.bf16.mxu1 %v2078_v62 }
  0x76   : > { %1905 = vmatpush3.bf16.msra.mxu0 %v2071_v12 }
  0x78   : > { %1951 = vmatpush3.bf16.msra.mxu1 %v2078_v62 }
  0x79   : > { %1907 = vmatmul.mubr.bf16.vlgmr.msra.gmra.mxu0 %v347_v17  ;;  %1952 = vmatprep.subr.bf16.mxu1 %v2079_v63 }
  0x7a   : > { %1910 = vmatprep.mubr.bf16.mxu0 %v348_v18 }
  0x7c   : > { %1953 = vmatpush3.bf16.msra.mxu1 %v2079_v63 }
  0x81   : > { %1911 = vmatmul.mubr.bf16.gmra.mxu0 %v349_v23 }
  0x82   : > { %1914 = vmatprep.mubr.bf16.mxu0 %v350_v24 }
  0x89   : > { %1915 = vmatmul.mubr.bf16.gmra.mxu0 %v351_v29 }
  0x8a   : > { %1918 = vmatprep.mubr.bf16.mxu0 %v352_v30 }
  0x91   : > { %1919 = vmatmul.mubr.bf16.gmra.mxu0 %v353_v35 }
  0x92   : > { %1922 = vmatprep.mubr.bf16.mxu0 %v354_v36 }
  0x99   : > { %1923 = vmatmul.mubr.bf16.gmra.mxu0 %v355_v41 }
  0x9a   : > { %1926 = vmatprep.mubr.bf16.mxu0 %v356_v42 }
  0xa1   : > { %1927 = vmatmul.mubr.bf16.gmra.mxu0 %v357_v47 }
  0xa2   : > { %1930 = vmatprep.mubr.bf16.mxu0 %v358_v48 }
  0xa9   : > { %1931 = vmatmul.mubr.bf16.gmra.mxu0 %v359_v53 }
  0xaa   : > { %1934 = vmatprep.mubr.bf16.mxu0 %v360_v54 }
  0xb1   : > { %1935 = vmatmul.mubr.bf16.gmra.mxu0 %v361_v57 }
 0x139   : > { %v1908_v0 = vpop.f32.mrf.mxu0 }
 0x13a   : > { %v476_v3 = vadd.f32 %v1908_v0, %v2497_v1 }
 0x13b   : > { %v467_v2 = vpop.f32.mrf.mxu0 }
 0x13c   : > { %v468_v5 = vadd.f32 %v2497_v1, %v467_v2  ;;  %v596_v8 = vmax.f32 %v476_v3, 0.0 }
 0x13d   : > { %v1909_v4 = vpop.f32.mrf.mxu0 }
 0x13e   : > { %v479_v6 = vadd.f32 %v1909_v4, %v2497_v1  ;;  %v594_v12 = vmax.f32 %v468_v5, 0.0 }
 0x13f   : > { %v470_v7 = vpop.f32.mrf.mxu0 }
 0x140   : > { %v597_v9 = vmax.f32 %v479_v6, 0.0  ;;  %v471_v10 = vadd.f32 %v2497_v1, %v470_v7 }
 0x141   : > { %v1912_v11 = vpop.f32.mrf.mxu0 }
 0x142   : > { %v1660_v13 = vpack.c.bf16 %v597_v9, %v596_v8  ;;  %v595_v14 = vmax.f32 %v471_v10, 0.0  ;;  %v492_v17 = vadd.f32 %v1912_v11, %v2497_v1 }
 0x143   : > { %v483_v15 = vpop.f32.mrf.mxu0 }
 0x144   : > { %1812 = vst [vmem:[%s2506_s15 + $0x8] sm:$0xff] %v1660_v13   ;;  %v1655_v16 = vpack.c.bf16 %v595_v14, %v594_v12  ;;  %v484_v19 = vadd.f32 %v2497_v1, %v483_v15  ;;  %v600_v22 = vmax.f32 %v492_v17, 0.0 }
 0x145   : > { %v1913_v18 = vpop.f32.mrf.mxu0 }
 0x146   : > { %1656 = vst [vmem:[%s2506_s15] sm:$0xff] %v1655_v16   ;;  %v495_v20 = vadd.f32 %v1913_v18, %v2497_v1  ;;  %v598_v26 = vmax.f32 %v484_v19, 0.0 }
 0x147   : > { %v486_v21 = vpop.f32.mrf.mxu0 }
 0x148   : > { %v601_v23 = vmax.f32 %v495_v20, 0.0  ;;  %v487_v24 = vadd.f32 %v2497_v1, %v486_v21 }
 0x149   : > { %v1916_v25 = vpop.f32.mrf.mxu0 }
 0x14a   : > { %v1670_v27 = vpack.c.bf16 %v601_v23, %v600_v22  ;;  %v599_v28 = vmax.f32 %v487_v24, 0.0  ;;  %v508_v31 = vadd.f32 %v1916_v25, %v2497_v1 }
 0x14b   : > { %v499_v29 = vpop.f32.mrf.mxu0  ;;  %v2081_v36 = vld [vmem:[%s2506_s15 + $0x8] sm:$0xff]  }
 0x14c   : > { %1814 = vst [vmem:[%s2506_s15 + $0x18] sm:$0xff] %v1670_v27   ;;  %v1665_v30 = vpack.c.bf16 %v599_v28, %v598_v26  ;;  %v500_v34 = vadd.f32 %v2497_v1, %v499_v29  ;;  %v604_v38 = vmax.f32 %v508_v31, 0.0 }
 0x14d   : > { %v1917_v32 = vpop.f32.mrf.mxu0  ;;  %v2080_v33 = vld [vmem:[%s2506_s15] sm:$0xff]  }
 0x14e   : > { %1813 = vst [vmem:[%s2506_s15 + $0x10] sm:$0xff] %v1665_v30   ;;  %v511_v35 = vadd.f32 %v1917_v32, %v2497_v1  ;;  %1954 = vmatprep.mubr.bf16.mxu1 %v2080_v33  ;;  %v602_v42 = vmax.f32 %v500_v34, 0.0 }
 0x14f   : > { %v502_v37 = vpop.f32.mrf.mxu0  ;;  %1955 = vmatmul.mubr.bf16.vlgmr.msra.gmra.mxu1 %v2081_v36 }
 0x150   : > { %v605_v39 = vmax.f32 %v511_v35, 0.0  ;;  %v503_v40 = vadd.f32 %v2497_v1, %v502_v37 }
 0x151   : > { %v1920_v41 = vpop.f32.mrf.mxu0 }
 0x152   : > { %v1680_v43 = vpack.c.bf16 %v605_v39, %v604_v38  ;;  %v603_v44 = vmax.f32 %v503_v40, 0.0  ;;  %v524_v47 = vadd.f32 %v1920_v41, %v2497_v1 }
 0x153   : > { %v515_v45 = vpop.f32.mrf.mxu0  ;;  %v2083_v52 = vld [vmem:[%s2506_s15 + $0x18] sm:$0xff]  }
 0x154   : > { %1816 = vst [vmem:[%s2506_s15 + $0x28] sm:$0xff] %v1680_v43   ;;  %v1675_v46 = vpack.c.bf16 %v603_v44, %v602_v42  ;;  %v516_v50 = vadd.f32 %v2497_v1, %v515_v45  ;;  %v608_v54 = vmax.f32 %v524_v47, 0.0 }
 0x155   : > { %v1921_v48 = vpop.f32.mrf.mxu0  ;;  %v2082_v49 = vld [vmem:[%s2506_s15 + $0x10] sm:$0xff]  }
 0x156   : > { %1815 = vst [vmem:[%s2506_s15 + $0x20] sm:$0xff] %v1675_v46   ;;  %v527_v51 = vadd.f32 %v1921_v48, %v2497_v1  ;;  %1958 = vmatprep.mubr.bf16.mxu1 %v2082_v49  ;;  %v606_v58 = vmax.f32 %v516_v50, 0.0 }
 0x157   : > { %v518_v53 = vpop.f32.mrf.mxu0  ;;  %1959 = vmatmul.mubr.bf16.gmra.mxu1 %v2083_v52 }
 0x158   : > { %v609_v55 = vmax.f32 %v527_v51, 0.0  ;;  %v519_v56 = vadd.f32 %v2497_v1, %v518_v53 }
 0x159   : > { %v1924_v57 = vpop.f32.mrf.mxu0 }
 0x15a   : > { %v1690_v59 = vpack.c.bf16 %v609_v55, %v608_v54  ;;  %v607_v60 = vmax.f32 %v519_v56, 0.0  ;;  %v540_v63 = vadd.f32 %v1924_v57, %v2497_v1 }
 0x15b   : > { %v531_v61 = vpop.f32.mrf.mxu0  ;;  %v2085_v5 = vld [vmem:[%s2506_s15 + $0x28] sm:$0xff]  }
 0x15c   : > { %1818 = vst [vmem:[%s2506_s15 + $0x38] sm:$0xff] %v1690_v59   ;;  %v1685_v62 = vpack.c.bf16 %v607_v60, %v606_v58  ;;  %v532_v3 = vadd.f32 %v2497_v1, %v531_v61  ;;  %v612_v7 = vmax.f32 %v540_v63, 0.0 }
 0x15d   : > { %v1925_v0 = vpop.f32.mrf.mxu0  ;;  %v2084_v2 = vld [vmem:[%s2506_s15 + $0x20] sm:$0xff]  }
 0x15e   : > { %1817 = vst [vmem:[%s2506_s15 + $0x30] sm:$0xff] %v1685_v62   ;;  %v543_v4 = vadd.f32 %v1925_v0, %v2497_v1  ;;  %1962 = vmatprep.mubr.bf16.mxu1 %v2084_v2  ;;  %v610_v11 = vmax.f32 %v532_v3, 0.0 }
 0x15f   : > { %v534_v6 = vpop.f32.mrf.mxu0  ;;  %1963 = vmatmul.mubr.bf16.gmra.mxu1 %v2085_v5 }
 0x160   : > { %v613_v8 = vmax.f32 %v543_v4, 0.0  ;;  %v535_v9 = vadd.f32 %v2497_v1, %v534_v6 }
 0x161   : > { %v1928_v10 = vpop.f32.mrf.mxu0 }
 0x162   : > { %v1700_v12 = vpack.c.bf16 %v613_v8, %v612_v7  ;;  %v611_v13 = vmax.f32 %v535_v9, 0.0  ;;  %v556_v16 = vadd.f32 %v1928_v10, %v2497_v1 }
 0x163   : > { %v547_v14 = vpop.f32.mrf.mxu0  ;;  %v2087_v21 = vld [vmem:[%s2506_s15 + $0x38] sm:$0xff]  }
 0x164   : > { %1820 = vst [vmem:[%s2506_s15 + $0x48] sm:$0xff] %v1700_v12   ;;  %v1695_v15 = vpack.c.bf16 %v611_v13, %v610_v11  ;;  %v548_v19 = vadd.f32 %v2497_v1, %v547_v14  ;;  %v616_v23 = vmax.f32 %v556_v16, 0.0 }
 0x165   : > { %v1929_v17 = vpop.f32.mrf.mxu0  ;;  %v2086_v18 = vld [vmem:[%s2506_s15 + $0x30] sm:$0xff]  }
 0x166   : > { %1819 = vst [vmem:[%s2506_s15 + $0x40] sm:$0xff] %v1695_v15   ;;  %v559_v20 = vadd.f32 %v1929_v17, %v2497_v1  ;;  %1966 = vmatprep.mubr.bf16.mxu1 %v2086_v18  ;;  %v614_v27 = vmax.f32 %v548_v19, 0.0 }
 0x167   : > { %v550_v22 = vpop.f32.mrf.mxu0  ;;  %1967 = vmatmul.mubr.bf16.gmra.mxu1 %v2087_v21 }
 0x168   : > { %v617_v24 = vmax.f32 %v559_v20, 0.0  ;;  %v551_v25 = vadd.f32 %v2497_v1, %v550_v22 }
 0x169   : > { %v1932_v26 = vpop.f32.mrf.mxu0 }
 0x16a   : > { %v1710_v28 = vpack.c.bf16 %v617_v24, %v616_v23  ;;  %v615_v29 = vmax.f32 %v551_v25, 0.0  ;;  %v572_v32 = vadd.f32 %v1932_v26, %v2497_v1 }
 0x16b   : > { %v563_v30 = vpop.f32.mrf.mxu0  ;;  %v2089_v37 = vld [vmem:[%s2506_s15 + $0x48] sm:$0xff]  }
 0x16c   : > { %1822 = vst [vmem:[%s2506_s15 + $0x58] sm:$0xff] %v1710_v28   ;;  %v1705_v31 = vpack.c.bf16 %v615_v29, %v614_v27  ;;  %v564_v35 = vadd.f32 %v2497_v1, %v563_v30  ;;  %v620_v39 = vmax.f32 %v572_v32, 0.0 }
 0x16d   : > { %v1933_v33 = vpop.f32.mrf.mxu0  ;;  %v2088_v34 = vld [vmem:[%s2506_s15 + $0x40] sm:$0xff]  }
 0x16e   : > { %1821 = vst [vmem:[%s2506_s15 + $0x50] sm:$0xff] %v1705_v31   ;;  %v575_v36 = vadd.f32 %v1933_v33, %v2497_v1  ;;  %1970 = vmatprep.mubr.bf16.mxu1 %v2088_v34  ;;  %v618_v43 = vmax.f32 %v564_v35, 0.0 }
 0x16f   : > { %v566_v38 = vpop.f32.mrf.mxu0  ;;  %1971 = vmatmul.mubr.bf16.gmra.mxu1 %v2089_v37 }
 0x170   : > { %v621_v40 = vmax.f32 %v575_v36, 0.0  ;;  %v567_v41 = vadd.f32 %v2497_v1, %v566_v38 }
 0x171   : > { %v1936_v42 = vpop.f32.mrf.mxu0 }
 0x172   : > { %v1720_v44 = vpack.c.bf16 %v621_v40, %v620_v39  ;;  %v619_v45 = vmax.f32 %v567_v41, 0.0  ;;  %v588_v48 = vadd.f32 %v1936_v42, %v2497_v1 }
 0x173   : > { %v579_v46 = vpop.f32.mrf.mxu0  ;;  %v2091_v53 = vld [vmem:[%s2506_s15 + $0x58] sm:$0xff]  }
 0x174   : > { %1824 = vst [vmem:[%s2506_s15 + $0x68] sm:$0xff] %v1720_v44   ;;  %v1715_v47 = vpack.c.bf16 %v619_v45, %v618_v43  ;;  %v580_v51 = vadd.f32 %v2497_v1, %v579_v46  ;;  %v624_v55 = vmax.f32 %v588_v48, 0.0 }
 0x175   : > { %v1937_v49 = vpop.f32.mrf.mxu0  ;;  %v2090_v50 = vld [vmem:[%s2506_s15 + $0x50] sm:$0xff]  }
 0x176   : > { %1823 = vst [vmem:[%s2506_s15 + $0x60] sm:$0xff] %v1715_v47   ;;  %v591_v52 = vadd.f32 %v1937_v49, %v2497_v1  ;;  %1974 = vmatprep.mubr.bf16.mxu1 %v2090_v50  ;;  %v622_v58 = vmax.f32 %v580_v51, 0.0 }
 0x177   : > { %v582_v54 = vpop.f32.mrf.mxu0  ;;  %1975 = vmatmul.mubr.bf16.gmra.mxu1 %v2091_v53 }
 0x178   : > { %v625_v56 = vmax.f32 %v591_v52, 0.0  ;;  %v583_v57 = vadd.f32 %v2497_v1, %v582_v54 }
 0x17a   : > { %v1730_v59 = vpack.c.bf16 %v625_v56, %v624_v55  ;;  %v623_v60 = vmax.f32 %v583_v57, 0.0 }
 0x17b   : > { %v2093_v63 = vld [vmem:[%s2506_s15 + $0x68] sm:$0xff]  }
 0x17c   : > { %1826 = vst [vmem:[%s2506_s15 + $0x78] sm:$0xff] %v1730_v59   ;;  %v1725_v61 = vpack.c.bf16 %v623_v60, %v622_v58 }
 0x17d   : > { %v2092_v62 = vld [vmem:[%s2506_s15 + $0x60] sm:$0xff]  }
 0x17e   : > { %1825 = vst [vmem:[%s2506_s15 + $0x70] sm:$0xff] %v1725_v61   ;;  %1978 = vmatprep.mubr.bf16.mxu1 %v2092_v62 }
 0x17f   : > { %1979 = vmatmul.mubr.bf16.gmra.mxu1 %v2093_v63 }
 0x183   : > { %v2095_v2 = vld [vmem:[%s2506_s15 + $0x78] sm:$0xff]  }
 0x185   : > { %v2094_v0 = vld [vmem:[%s2506_s15 + $0x70] sm:$0xff]  }
 0x186   : > { %1982 = vmatprep.mubr.bf16.mxu1 %v2094_v0 }
 0x187   : > { %1983 = vmatmul.mubr.bf16.gmra.mxu1 %v2095_v2 }
 0x188   : > { %2189 = shalt.err (!%p2186_p9)
}
 0x189   : > { %s2190_s27 = scalar_lea.hbm %s2575_s20, 2048  ;;  %s2194_s12 = scalar_lea.hbm %s2718_s5, 8192 }
 0x18a   : > { %p2191_p12 = scmp.ne.s32.totalorder %s2575_s20, %s2190_s27  ;;  %p2195_p4 = scmp.lt.s32.totalorder %s2575_s20, %s2718_s5 }
 0x18b   : > { %p2196_p8 = scmp.lt.s32.totalorder %s2194_s12, %s2190_s27 }
 0x18c   : > { %p2192_p3 = pnand %p2191_p12, %p2735_p0 }
 0x18d   : > { %p2197_p5 = por %p2196_p8, %p2195_p4 }
 0x18e   : > { %p2193_p13 = pneg %p2192_p3 }
 0x190   : > { %p2198_p10 = pnand %p2197_p5, %p2193_p13 }
 0x192   : > { %2201 = shalt.err (!%p2198_p10)
}
 0x193   : > { %s2284_s26 = smov 64   ;;  %s2285_s11 = smov 4   ;;  %v2608_v3 = vld [vmem:[%s2717_s4] ss:$0 sm:$0xff] }
 0x194   : > { %1996 = dma.vmem_to_hbm [thread:$0]  (%p2735_p0), %s2577_s17, 2048, %s2575_s20, %s1307_s18, %s2284_s26, %s2284_s26, %s2285_s11  }
 0x195   : > { %s2616_s17 = scalar_lea.vmem [#allocation9], %s1477_s13  ;;  %s2667_s27 = scalar_lea.hbm %s2719_s6, %s1650_s16 }
 0x196   : > { %s1341_s13 = sshll.u32 %s2616_s17, 4  ;;  %s1312_s15 = scalar_lea.sflag [#allocation10], %s2448_s9  ;;  %s2669_s13 = int_to_ptr.vmem [resolvable:$true] %s1341_s13 }
 0x197   : > { %s2202_s12 = scalar_lea.vmem %s2669_s13, 2048  ;;  %s2286_s14 = smov [#allocation9]  }
 0x198   : > { %p2203_p1 = scmp.ne.s32.totalorder %s2669_s13, %s2202_s12  ;;  %s2206_s10 = sshll.u32 %s2286_s14, 4  ;;  %s2207_s10 = int_to_ptr.vmem [resolvable:$false] %s2206_s10 }
 0x199   : > { %s2208_s25 = scalar_lea.vmem %s2207_s10, 4096  ;;  %p2209_p11 = scmp.lt.s32.totalorder %s2669_s13, %s2207_s10 }
 0x19a   : > { %p2204_p2 = pnand %p2203_p1, %p2735_p0  ;;  %p2210_p7 = scmp.lt.s32.totalorder %s2208_s25, %s2202_s12 }
 0x19c   : > { %p2205_p6 = pneg %p2204_p2  ;;  %p2211_p9 = por %p2210_p7, %p2209_p11 }
 0x19e   : > { %p2212_p12 = pnand %p2211_p9, %p2205_p6 }
 0x20f   : > { %v1956_v1 = vpop.f32.mrf.mxu1 }
 0x210   : > { %v1028_v6 = vadd.f32 %v1956_v1, %v2608_v3 }
 0x211   : > { %v1019_v4 = vpop.f32.mrf.mxu1 }
 0x212   : > { %v1020_v9 = vadd.f32 %v2608_v3, %v1019_v4 }
 0x213   : > { %v1957_v5 = vpop.f32.mrf.mxu1 }
 0x214   : > { %v1031_v7 = vadd.f32 %v1957_v5, %v2608_v3 }
 0x215   : > { %v1022_v8 = vpop.f32.mrf.mxu1 }
 0x216   : > { %v1740_v10 = vpack.c.bf16 %v1031_v7, %v1028_v6  ;;  %v1023_v11 = vadd.f32 %v2608_v3, %v1022_v8 }
 0x217   : > { %v1960_v12 = vpop.f32.mrf.mxu1 }
 0x218   : > { %1827 = vst [vmem:[%s2616_s17 + $0x8] sm:$0xff] %v1740_v10   ;;  %v1735_v13 = vpack.c.bf16 %v1023_v11, %v1020_v9  ;;  %v1044_v16 = vadd.f32 %v1960_v12, %v2608_v3 }
 0x219   : > { %v1035_v14 = vpop.f32.mrf.mxu1 }
 0x21a   : > { %1736 = vst [vmem:[%s2616_s17] sm:$0xff] %v1735_v13   ;;  %v1036_v19 = vadd.f32 %v2608_v3, %v1035_v14 }
 0x21b   : > { %v1961_v15 = vpop.f32.mrf.mxu1 }
 0x21c   : > { %v1047_v17 = vadd.f32 %v1961_v15, %v2608_v3 }
 0x21d   : > { %v1038_v18 = vpop.f32.mrf.mxu1 }
 0x21e   : > { %v1750_v20 = vpack.c.bf16 %v1047_v17, %v1044_v16  ;;  %v1039_v21 = vadd.f32 %v2608_v3, %v1038_v18 }
 0x21f   : > { %v1964_v22 = vpop.f32.mrf.mxu1 }
 0x220   : > { %1829 = vst [vmem:[%s2616_s17 + $0x18] sm:$0xff] %v1750_v20   ;;  %v1745_v23 = vpack.c.bf16 %v1039_v21, %v1036_v19  ;;  %v1060_v26 = vadd.f32 %v1964_v22, %v2608_v3 }
 0x221   : > { %v1051_v24 = vpop.f32.mrf.mxu1 }
 0x222   : > { %1828 = vst [vmem:[%s2616_s17 + $0x10] sm:$0xff] %v1745_v23   ;;  %v1052_v29 = vadd.f32 %v2608_v3, %v1051_v24 }
 0x223   : > { %v1965_v25 = vpop.f32.mrf.mxu1 }
 0x224   : > { %v1063_v27 = vadd.f32 %v1965_v25, %v2608_v3 }
 0x225   : > { %v1054_v28 = vpop.f32.mrf.mxu1 }
 0x226   : > { %v1760_v30 = vpack.c.bf16 %v1063_v27, %v1060_v26  ;;  %v1055_v31 = vadd.f32 %v2608_v3, %v1054_v28 }
 0x227   : > { %v1968_v32 = vpop.f32.mrf.mxu1 }
 0x228   : > { %1831 = vst [vmem:[%s2616_s17 + $0x28] sm:$0xff] %v1760_v30   ;;  %v1755_v33 = vpack.c.bf16 %v1055_v31, %v1052_v29  ;;  %v1076_v36 = vadd.f32 %v1968_v32, %v2608_v3 }
 0x229   : > { %v1067_v34 = vpop.f32.mrf.mxu1 }
 0x22a   : > { %1830 = vst [vmem:[%s2616_s17 + $0x20] sm:$0xff] %v1755_v33   ;;  %v1068_v39 = vadd.f32 %v2608_v3, %v1067_v34 }
 0x22b   : > { %v1969_v35 = vpop.f32.mrf.mxu1 }
 0x22c   : > { %v1079_v37 = vadd.f32 %v1969_v35, %v2608_v3 }
 0x22d   : > { %v1070_v38 = vpop.f32.mrf.mxu1 }
 0x22e   : > { %v1770_v40 = vpack.c.bf16 %v1079_v37, %v1076_v36  ;;  %v1071_v41 = vadd.f32 %v2608_v3, %v1070_v38 }
 0x22f   : > { %v1972_v42 = vpop.f32.mrf.mxu1 }
 0x230   : > { %1833 = vst [vmem:[%s2616_s17 + $0x38] sm:$0xff] %v1770_v40   ;;  %v1765_v43 = vpack.c.bf16 %v1071_v41, %v1068_v39  ;;  %v1092_v46 = vadd.f32 %v1972_v42, %v2608_v3 }
 0x231   : > { %v1083_v44 = vpop.f32.mrf.mxu1 }
 0x232   : > { %1832 = vst [vmem:[%s2616_s17 + $0x30] sm:$0xff] %v1765_v43   ;;  %v1084_v49 = vadd.f32 %v2608_v3, %v1083_v44 }
 0x233   : > { %v1973_v45 = vpop.f32.mrf.mxu1 }
 0x234   : > { %v1095_v47 = vadd.f32 %v1973_v45, %v2608_v3 }
 0x235   : > { %v1086_v48 = vpop.f32.mrf.mxu1 }
 0x236   : > { %v1780_v50 = vpack.c.bf16 %v1095_v47, %v1092_v46  ;;  %v1087_v51 = vadd.f32 %v2608_v3, %v1086_v48 }
 0x237   : > { %v1976_v52 = vpop.f32.mrf.mxu1 }
 0x238   : > { %1835 = vst [vmem:[%s2616_s17 + $0x48] sm:$0xff] %v1780_v50   ;;  %v1775_v53 = vpack.c.bf16 %v1087_v51, %v1084_v49  ;;  %v1108_v56 = vadd.f32 %v1976_v52, %v2608_v3 }
 0x239   : > { %v1099_v54 = vpop.f32.mrf.mxu1 }
 0x23a   : > { %1834 = vst [vmem:[%s2616_s17 + $0x40] sm:$0xff] %v1775_v53   ;;  %v1100_v59 = vadd.f32 %v2608_v3, %v1099_v54 }
 0x23b   : > { %v1977_v55 = vpop.f32.mrf.mxu1 }
 0x23c   : > { %v1111_v57 = vadd.f32 %v1977_v55, %v2608_v3 }
 0x23d   : > { %v1102_v58 = vpop.f32.mrf.mxu1 }
 0x23e   : > { %v1790_v60 = vpack.c.bf16 %v1111_v57, %v1108_v56  ;;  %v1103_v61 = vadd.f32 %v2608_v3, %v1102_v58 }
 0x23f   : > { %v1980_v62 = vpop.f32.mrf.mxu1 }
 0x240   : > { %1837 = vst [vmem:[%s2616_s17 + $0x58] sm:$0xff] %v1790_v60   ;;  %v1785_v63 = vpack.c.bf16 %v1103_v61, %v1100_v59  ;;  %v1124_v1 = vadd.f32 %v1980_v62, %v2608_v3 }
 0x241   : > { %v1115_v0 = vpop.f32.mrf.mxu1 }
 0x242   : > { %1836 = vst [vmem:[%s2616_s17 + $0x50] sm:$0xff] %v1785_v63   ;;  %v1116_v6 = vadd.f32 %v2608_v3, %v1115_v0 }
 0x243   : > { %v1981_v2 = vpop.f32.mrf.mxu1 }
 0x244   : > { %v1127_v4 = vadd.f32 %v1981_v2, %v2608_v3 }
 0x245   : > { %v1118_v5 = vpop.f32.mrf.mxu1 }
 0x246   : > { %v1800_v7 = vpack.c.bf16 %v1127_v4, %v1124_v1  ;;  %v1119_v8 = vadd.f32 %v2608_v3, %v1118_v5 }
 0x247   : > { %v1984_v9 = vpop.f32.mrf.mxu1 }
 0x248   : > { %1839 = vst [vmem:[%s2616_s17 + $0x68] sm:$0xff] %v1800_v7   ;;  %v1795_v10 = vpack.c.bf16 %v1119_v8, %v1116_v6  ;;  %v1140_v13 = vadd.f32 %v1984_v9, %v2608_v3 }
 0x249   : > { %v1131_v11 = vpop.f32.mrf.mxu1 }
 0x24a   : > { %1838 = vst [vmem:[%s2616_s17 + $0x60] sm:$0xff] %v1795_v10   ;;  %v1132_v16 = vadd.f32 %v2608_v3, %v1131_v11 }
 0x24b   : > { %v1985_v12 = vpop.f32.mrf.mxu1 }
 0x24c   : > { %v1143_v14 = vadd.f32 %v1985_v12, %v2608_v3 }
 0x24d   : > { %v1134_v15 = vpop.f32.mrf.mxu1 }
 0x24e   : > { %v1810_v17 = vpack.c.bf16 %v1143_v14, %v1140_v13  ;;  %v1135_v18 = vadd.f32 %v2608_v3, %v1134_v15 }
 0x250   : > { %1841 = vst [vmem:[%s2616_s17 + $0x78] sm:$0xff] %v1810_v17   ;;  %v1805_v19 = vpack.c.bf16 %v1135_v18, %v1132_v16 }
 0x252   : > { %1840 = vst [vmem:[%s2616_s17 + $0x70] sm:$0xff] %v1805_v19  }
 0x253   : > { %2215 = shalt.err (!%p2212_p12)
}
 0x254   : > { %s2216_s16 = scalar_lea.hbm %s2667_s27, 2048  ;;  %s2220_s29 = scalar_lea.hbm %s2719_s6, 8192 }
 0x255   : > { %p2217_p3 = scmp.ne.s32.totalorder %s2667_s27, %s2216_s16  ;;  %p2221_p8 = scmp.lt.s32.totalorder %s2667_s27, %s2719_s6 }
 0x256   : > { %p2222_p5 = scmp.lt.s32.totalorder %s2220_s29, %s2216_s16 }
 0x257   : > { %p2218_p13 = pnand %p2217_p3, %p2735_p0 }
 0x258   : > { %p2223_p10 = por %p2222_p5, %p2221_p8 }
 0x259   : > { %p2219_p4 = pneg %p2218_p13 }
 0x25b   : > { %p2224_p1 = pnand %p2223_p10, %p2219_p4 }
 0x25d   : > { %2227 = shalt.err (!%p2224_p1)
}
 0x25e   : > { %1997 = dma.vmem_to_hbm [thread:$0]  (%p2735_p0), %s2669_s13, 2048, %s2667_s27, %s1312_s15, %s2284_s26, %s2284_s26, %s2285_s11  }
 0x25f PF: > { %p2023_p2 = scmp.ge.s32.totalorder %s2274_s24, 2  ;;  %s1356_s18 = sand.u32 1, %s2262_s21  }
 0x260   : > { %p2736_p6 = scmp.ne.s32.totalorder %s2725_s28, 0  ;;  %s1357_s12 = scalar_lea.sflag [#allocation4], %s1356_s18 }
 0x262   : > { %p2012_p11 = pnand %p2023_p2, %p2736_p6 }
 0x264   : > { %p2013_p7 = pneg %p2012_p11 }
 0x266   : > { %2253 = dma.done.wait (%p2013_p7), %s1357_s12, 2048  }
 0x267   : > { %2255 = vsyncadd (%p2013_p7), %s1357_s12, 4294965248  ;;  %s1366_s14 = scalar_lea.sflag [#allocation10], %s1356_s18 }
 0x268   : > { %2257 = dma.done.wait (%p2013_p7), %s1366_s14, 2048  }
 0x269   : > { %2259 = vsyncadd (%p2013_p7), %s1366_s14, 4294965248  ;;  %p24_p0 = scmp.ge.s32.totalorder %s2393_s19, 6   ;;  %s2737_s21 = smov %s2266_s22 }
 0x26a   : > { %s2738_s22 = smov %s2270_s23  ;;  %s2739_s23 = smov %s2409_s7 }
 0x26b   : > { %s2740_s24 = smov %s2393_s19  ;;  %26 = sbr.rel (!%p24_p0) target bundleno = 8 (0x8), region = 110 }
 0x270   :  { %1371 = vsyncpa [#allocation3], 1 }
 0x271   :  { %1373 = vsyncpa [#allocation3 + $0x1], 1 }
 0x272   :  { %1374 = vsyncpa [#allocation6], 1 }
 0x273   :  { %1375 = vsyncpa [#allocation4], 1 }
 0x274   :  { %1377 = vsyncpa [#allocation4 + $0x1], 1 }
 0x275   :  { %1378 = vsyncpa [#allocation10], 1 }
 0x276   :  { %1380 = vsyncpa [#allocation10 + $0x1], 1 }

</bundles_post_ra>
